<compile_context>
chip_gen: v7x
topology: tpu7x:2x2x1
jax: 0.10.0
libtpu: 0.0.40
codegen_flags: <defaults>
</compile_context>

<pallas_src>
import jax
import jax.numpy as jnp
from jax.experimental import pallas as pl
from jax.experimental.pallas import tpu as pltpu


def _mlp_kernel(x_ref, w1_ref, b1_ref, w2_ref, b2_ref, w3_ref, b3_ref,
                w4_ref, b4_ref, o_ref):
    """Fused MLP forward for one batch tile.

    x_ref : [bm, D_in] bf16
    w1    : [D_in, H1] bf16   b1 : [1, H1] f32
    w2    : [H1,  H2]  bf16   b2 : [1, H2] f32
    w3    : [H2,  H3]  bf16   b3 : [1, H3] f32
    w4    : [1,  H3]   f32 (row form)      b4 : [1] f32 (SMEM)
    o_ref : [1, 1, bm] f32 (lane-dense row per tile)
    """
    bf16 = jnp.bfloat16
    x = x_ref[...]

    # Layer 1: bias + ReLU + bf16 cast fused into one expression so only the
    # bf16 activation is materialized/stored (keeps v5e's single vst slot free).
    h1 = jnp.maximum(
        jnp.dot(x, w1_ref[...], preferred_element_type=jnp.float32) + b1_ref[...],
        0.0).astype(bf16)
    # nn.Dropout(0.2): identity in eval mode.
    # TODO(synk): training-mode dropout (pltpu.prng_random_bits mask) not implemented.

    h2 = jnp.maximum(
        jnp.dot(h1, w2_ref[...], preferred_element_type=jnp.float32) + b2_ref[...],
        0.0).astype(bf16)

    h3 = jnp.maximum(
        jnp.dot(h2, w3_ref[...], preferred_element_type=jnp.float32) + b3_ref[...],
        0.0)

    # Final layer (H3 -> 1): N=1 matmul wastes the MXU, so use a VPU multiply +
    # XLU row-reduce, and emit a lane-dense [1, bm] row (unmasked stores)
    # instead of a [bm, 1] column of masked single-lane stores.
    row = jnp.sum(h3 * w4_ref[...], axis=-1) + b4_ref[0]      # [bm]
    o_ref[...] = row.reshape(1, 1, -1).astype(o_ref.dtype)


def _round_up(n, m):
    return ((n + m - 1) // m) * m


def prepare_params(params):
    """One-time conversion of f32 [in,out] params into kernel layout/dtypes."""
    (w1, b1), (w2, b2), (w3, b3), (w4, b4) = params
    return (
        w1.astype(jnp.bfloat16), b1.reshape(1, -1).astype(jnp.float32),
        w2.astype(jnp.bfloat16), b2.reshape(1, -1).astype(jnp.float32),
        w3.astype(jnp.bfloat16), b3.reshape(1, -1).astype(jnp.float32),
        w4.T.astype(jnp.float32),             # [1, H3] row for the VPU final layer
        b4.reshape(-1).astype(jnp.float32),   # [1] scalar bias, lives in SMEM
    )


def mlp_forward(x, kparams, *, bm=1024):
    """Runs Net.forward(x) = squeeze(MLP(x)) with one fused Pallas kernel."""
    w1b, b1r, w2b, b2r, w3b, b3r, w4row, b4v = kparams
    B, D_in = x.shape
    H1, H2, H3 = w1b.shape[1], w2b.shape[1], w3b.shape[1]

    xb = x.astype(jnp.bfloat16)

    # Batch tiling: 16-row multiples (bf16 sublane packing). Pick the number of
    # tiles first so padding waste is < 16 rows per tile, and keep >= 2 grid
    # steps whenever the padded batch has >= 32 rows so both v7x TensorCores
    # get work through the "parallel" grid axis.
    B16 = _round_up(B, 16)
    nt = max(-(-B16 // bm), 2 if B16 >= 32 else 1)
    bm_eff = _round_up(-(-B16 // nt), 16)
    nt = -(-B16 // bm_eff)
    padded_B = nt * bm_eff
    if padded_B != B:
        xb = jnp.pad(xb, ((0, padded_B - B), (0, 0)))

    # VMEM budget: resident weights + double-buffered x/out tiles + activation
    # staging (f32 accumulators + bf16 copies). Clamp to 48 MiB so we never
    # exceed v7x's 64 MiB physical VMEM; the floor of 32 MiB lifts v5e's 16 MiB
    # default scoped limit.
    est = ((D_in * H1 + H1 * H2 + H2 * H3) * 2
           + (H1 + H2 + H3 + H3 + 1) * 4
           + 2 * bm_eff * D_in * 2 + 2 * bm_eff * 4
           + bm_eff * (H1 + H2 + H3) * 4 + bm_eff * (H1 + H2) * 2)
    vmem_limit = int(min(max(2 * est, 32 << 20), 48 << 20))

    # Grid-invariant operands: single-buffered, VMEM-resident across all steps.
    def resident(shape):
        return pl.BlockSpec(shape, lambda i: (0, 0), pipeline_mode=pl.Buffered(1))

    out = pl.pallas_call(
        _mlp_kernel,
        out_shape=jax.ShapeDtypeStruct((nt, 1, bm_eff), jnp.float32),
        grid_spec=pl.GridSpec(
            grid=(nt,),
            in_specs=[
                pl.BlockSpec((bm_eff, D_in), lambda i: (i, 0)),   # x: tiled over batch
                resident((D_in, H1)), resident((1, H1)),
                resident((H1, H2)),   resident((1, H2)),
                resident((H2, H3)),   resident((1, H3)),
                resident((1, H3)),
                pl.BlockSpec(memory_space=pltpu.MemorySpace.SMEM),  # b4 scalar
            ],
            out_specs=pl.BlockSpec((1, 1, bm_eff), lambda i: (i, 0, 0)),
        ),
        compiler_params=pltpu.CompilerParams(
            dimension_semantics=("parallel",),
            vmem_limit_bytes=vmem_limit,
        ),
    )(xb, w1b, b1r, w2b, b2r, w3b, b3r, w4row, b4v)

    # .squeeze() as in the PyTorch module (D_out == 1 -> [B]; [1] -> scalar).
    return jnp.squeeze(out.reshape(-1)[:B])


def init_params(key, D_in, H1=1024, H2=256, H3=64, D_out=1):
    """PyTorch-style Linear init (uniform +/- 1/sqrt(fan_in)), weights as [in, out]."""
    dims = [(D_in, H1), (H1, H2), (H2, H3), (H3, D_out)]
    params = []
    for (fan_in, fan_out) in dims:
        key, kw, kb = jax.random.split(key, 3)
        bound = 1.0 / jnp.sqrt(jnp.float32(fan_in))
        w = jax.random.uniform(kw, (fan_in, fan_out), jnp.float32, -bound, bound)
        b = jax.random.uniform(kb, (1, fan_out), jnp.float32, -bound, bound)
        params.append((w, b))
    return params


def _reference_forward(x, params):
    """Pure-JAX reference using the same bf16 weight/activation casts as the kernel."""
    (w1, b1), (w2, b2), (w3, b3), (w4, b4) = params
    bf16 = jnp.bfloat16
    h = jnp.maximum(jnp.dot(x.astype(bf16), w1.astype(bf16),
                            preferred_element_type=jnp.float32) + b1, 0.0).astype(bf16)
    h = jnp.maximum(jnp.dot(h, w2.astype(bf16),
                            preferred_element_type=jnp.float32) + b2, 0.0).astype(bf16)
    h = jnp.maximum(jnp.dot(h, w3.astype(bf16),
                            preferred_element_type=jnp.float32) + b3, 0.0)
    out = jnp.sum(h * w4.T.astype(jnp.float32), axis=-1) + b4.reshape(-1)
    return jnp.squeeze(out)


if __name__ == "__main__":
    key = jax.random.PRNGKey(0)
    B, D_in = 8, 32

    kx, kp = jax.random.split(key)
    x = jax.random.normal(kx, (B, D_in), jnp.float32)
    params = init_params(kp, D_in)
    kparams = prepare_params(params)   # pre-cast weights to bf16 once (out of the hot path)

    fwd = jax.jit(mlp_forward)
    y = jax.block_until_ready(fwd(x, kparams))

    y_ref = _reference_forward(x, params)
    assert y.shape == (B,), y.shape
    assert jnp.allclose(y, y_ref, atol=5e-3, rtol=5e-3), "mismatch vs reference"

    print("KERNEL_OK")
</pallas_src>

<mosaic_0001>
module attributes {stable_mosaic.version = 11 : i64} {
  func.func @_mlp_kernel(%arg0: i32, %arg1: memref<16x32xbf16, #tpu.memory_space<vmem>>, %arg2: memref<32x1024xbf16, #tpu.memory_space<vmem>>, %arg3: memref<1x1024xf32, #tpu.memory_space<vmem>>, %arg4: memref<1024x256xbf16, #tpu.memory_space<vmem>>, %arg5: memref<1x256xf32, #tpu.memory_space<vmem>>, %arg6: memref<256x64xbf16, #tpu.memory_space<vmem>>, %arg7: memref<1x64xf32, #tpu.memory_space<vmem>>, %arg8: memref<1x64xf32, #tpu.memory_space<vmem>>, %arg9: memref<1xf32, #tpu.memory_space<smem>>, %arg10: memref<1x1x16xf32, #tpu.memory_space<vmem>>) attributes {dimension_semantics = [#tpu.dimension_semantics<parallel>], iteration_bounds = array<i64: 1>, scalar_prefetch = 0 : i64, scratch_operands = 0 : i64, tpu.core_type = #tpu.core_type<tc>, window_params = [{transform_indices = @transform_0, window_bounds = array<i64: 16, 32>}, {pipeline_mode = #tpu.pipeline_mode<synchronous>, transform_indices = @transform_1, window_bounds = array<i64: 32, 1024>}, {pipeline_mode = #tpu.pipeline_mode<synchronous>, transform_indices = @transform_2, window_bounds = array<i64: 1, 1024>}, {pipeline_mode = #tpu.pipeline_mode<synchronous>, transform_indices = @transform_3, window_bounds = array<i64: 1024, 256>}, {pipeline_mode = #tpu.pipeline_mode<synchronous>, transform_indices = @transform_4, window_bounds = array<i64: 1, 256>}, {pipeline_mode = #tpu.pipeline_mode<synchronous>, transform_indices = @transform_5, window_bounds = array<i64: 256, 64>}, {pipeline_mode = #tpu.pipeline_mode<synchronous>, transform_indices = @transform_6, window_bounds = array<i64: 1, 64>}, {pipeline_mode = #tpu.pipeline_mode<synchronous>, transform_indices = @transform_7, window_bounds = array<i64: 1, 64>}, {transform_indices = @transform_8, window_bounds = array<i64: 1>}, {transform_indices = @transform_9, window_bounds = array<i64: 1, 1, 16>}]} {
    %c0 = arith.constant 0 : index
    %c0_0 = arith.constant 0 : index
    %0 = vector.load %arg1[%c0, %c0_0] : memref<16x32xbf16, #tpu.memory_space<vmem>>, vector<16x32xbf16>
    %c0_1 = arith.constant 0 : index
    %c0_2 = arith.constant 0 : index
    %1 = vector.load %arg2[%c0_1, %c0_2] : memref<32x1024xbf16, #tpu.memory_space<vmem>>, vector<32x1024xbf16>
    %cst = arith.constant dense<0.000000e+00> : vector<16x1024xf32>
    %2 = tpu.matmul %0, %1, %cst {dimension_numbers = #tpu.dot_dimension_numbers<[1], [0], [0], [1], [0, 0, 1, 1], [], []>} : vector<16x32xbf16>, vector<32x1024xbf16>, vector<16x1024xf32> -> vector<16x1024xf32>
    %c0_3 = arith.constant 0 : index
    %c0_4 = arith.constant 0 : index
    %3 = vector.load %arg3[%c0_3, %c0_4] : memref<1x1024xf32, #tpu.memory_space<vmem>>, vector<1x1024xf32>
    %4 = vector.broadcast %3 : vector<1x1024xf32> to vector<16x1024xf32>
    %5 = arith.addf %2, %4 : vector<16x1024xf32>
    %cst_5 = arith.constant 0.000000e+00 : f32
    %6 = vector.broadcast %cst_5 : f32 to vector<16x1024xf32>
    %7 = arith.maximumf %5, %6 : vector<16x1024xf32>
    %8 = arith.truncf %7 : vector<16x1024xf32> to vector<16x1024xbf16>
    %c0_6 = arith.constant 0 : index
    %c0_7 = arith.constant 0 : index
    %9 = vector.load %arg4[%c0_6, %c0_7] : memref<1024x256xbf16, #tpu.memory_space<vmem>>, vector<1024x256xbf16>
    %cst_8 = arith.constant dense<0.000000e+00> : vector<16x256xf32>
    %10 = tpu.matmul %8, %9, %cst_8 {dimension_numbers = #tpu.dot_dimension_numbers<[1], [0], [0], [1], [0, 0, 1, 1], [], []>} : vector<16x1024xbf16>, vector<1024x256xbf16>, vector<16x256xf32> -> vector<16x256xf32>
    %c0_9 = arith.constant 0 : index
    %c0_10 = arith.constant 0 : index
    %11 = vector.load %arg5[%c0_9, %c0_10] : memref<1x256xf32, #tpu.memory_space<vmem>>, vector<1x256xf32>
    %12 = vector.broadcast %11 : vector<1x256xf32> to vector<16x256xf32>
    %13 = arith.addf %10, %12 : vector<16x256xf32>
    %cst_11 = arith.constant 0.000000e+00 : f32
    %14 = vector.broadcast %cst_11 : f32 to vector<16x256xf32>
    %15 = arith.maximumf %13, %14 : vector<16x256xf32>
    %16 = arith.truncf %15 : vector<16x256xf32> to vector<16x256xbf16>
    %c0_12 = arith.constant 0 : index
    %c0_13 = arith.constant 0 : index
    %17 = vector.load %arg6[%c0_12, %c0_13] : memref<256x64xbf16, #tpu.memory_space<vmem>>, vector<256x64xbf16>
    %cst_14 = arith.constant dense<0.000000e+00> : vector<16x64xf32>
    %18 = tpu.matmul %16, %17, %cst_14 {dimension_numbers = #tpu.dot_dimension_numbers<[1], [0], [0], [1], [0, 0, 1, 1], [], []>} : vector<16x256xbf16>, vector<256x64xbf16>, vector<16x64xf32> -> vector<16x64xf32>
    %c0_15 = arith.constant 0 : index
    %c0_16 = arith.constant 0 : index
    %19 = vector.load %arg7[%c0_15, %c0_16] : memref<1x64xf32, #tpu.memory_space<vmem>>, vector<1x64xf32>
    %20 = vector.broadcast %19 : vector<1x64xf32> to vector<16x64xf32>
    %21 = arith.addf %18, %20 : vector<16x64xf32>
    %cst_17 = arith.constant 0.000000e+00 : f32
    %22 = vector.broadcast %cst_17 : f32 to vector<16x64xf32>
    %23 = arith.maximumf %21, %22 : vector<16x64xf32>
    %c0_18 = arith.constant 0 : index
    %c0_19 = arith.constant 0 : index
    %24 = vector.load %arg8[%c0_18, %c0_19] : memref<1x64xf32, #tpu.memory_space<vmem>>, vector<1x64xf32>
    %25 = vector.broadcast %24 : vector<1x64xf32> to vector<16x64xf32>
    %26 = arith.mulf %23, %25 : vector<16x64xf32>
    %cst_20 = arith.constant dense<0.000000e+00> : vector<16xf32>
    %27 = vector.multi_reduction <add>, %26, %cst_20 [1] : vector<16x64xf32> to vector<16xf32>
    %c0_21 = arith.constant 0 : index
    %28 = memref.load %arg9[%c0_21] : memref<1xf32, #tpu.memory_space<smem>>
    %29 = vector.broadcast %28 : f32 to vector<16xf32>
    %30 = arith.addf %27, %29 : vector<16xf32>
    %31 = vector.shape_cast %30 : vector<16xf32> to vector<1x1x16xf32>
    %c0_22 = arith.constant 0 : index
    %c0_23 = arith.constant 0 : index
    %c0_24 = arith.constant 0 : index
    %32 = vector.load %arg10[%c0_22, %c0_23, %c0_24] : memref<1x1x16xf32, #tpu.memory_space<vmem>>, vector<1x1x16xf32>
    tpu.vector_store %arg10[%c0_22, %c0_23, %c0_24], %31 {strides = array<i32>} : memref<1x1x16xf32, #tpu.memory_space<vmem>>, vector<1x1x16xf32>,
    return
  }
  func.func @transform_0(%arg0: i32) -> (i32, i32) {
    %c0_i32 = arith.constant 0 : i32
    %c0_i32_0 = arith.constant 0 : i32
    return %arg0, %c0_i32 : i32, i32
  }
  func.func @transform_1(%arg0: i32) -> (i32, i32) {
    %c0_i32 = arith.constant 0 : i32
    %c0_i32_0 = arith.constant 0 : i32
    %c0_i32_1 = arith.constant 0 : i32
    return %c0_i32, %c0_i32_0 : i32, i32
  }
  func.func @transform_2(%arg0: i32) -> (i32, i32) {
    %c0_i32 = arith.constant 0 : i32
    %c0_i32_0 = arith.constant 0 : i32
    %c0_i32_1 = arith.constant 0 : i32
    return %c0_i32, %c0_i32_0 : i32, i32
  }
  func.func @transform_3(%arg0: i32) -> (i32, i32) {
    %c0_i32 = arith.constant 0 : i32
    %c0_i32_0 = arith.constant 0 : i32
    %c0_i32_1 = arith.constant 0 : i32
    return %c0_i32, %c0_i32_0 : i32, i32
  }
  func.func @transform_4(%arg0: i32) -> (i32, i32) {
    %c0_i32 = arith.constant 0 : i32
    %c0_i32_0 = arith.constant 0 : i32
    %c0_i32_1 = arith.constant 0 : i32
    return %c0_i32, %c0_i32_0 : i32, i32
  }
  func.func @transform_5(%arg0: i32) -> (i32, i32) {
    %c0_i32 = arith.constant 0 : i32
    %c0_i32_0 = arith.constant 0 : i32
    %c0_i32_1 = arith.constant 0 : i32
    return %c0_i32, %c0_i32_0 : i32, i32
  }
  func.func @transform_6(%arg0: i32) -> (i32, i32) {
    %c0_i32 = arith.constant 0 : i32
    %c0_i32_0 = arith.constant 0 : i32
    %c0_i32_1 = arith.constant 0 : i32
    return %c0_i32, %c0_i32_0 : i32, i32
  }
  func.func @transform_7(%arg0: i32) -> (i32, i32) {
    %c0_i32 = arith.constant 0 : i32
    %c0_i32_0 = arith.constant 0 : i32
    %c0_i32_1 = arith.constant 0 : i32
    return %c0_i32, %c0_i32_0 : i32, i32
  }
  func.func @transform_8(%arg0: i32) -> i32 {
    %c0_i32 = arith.constant 0 : i32
    %c0_i32_0 = arith.constant 0 : i32
    return %c0_i32 : i32
  }
  func.func @transform_9(%arg0: i32) -> (i32, i32, i32) {
    %c0_i32 = arith.constant 0 : i32
    %c0_i32_0 = arith.constant 0 : i32
    %c0_i32_1 = arith.constant 0 : i32
    return %arg0, %c0_i32, %c0_i32_0 : i32, i32, i32
  }
}

</mosaic_0001>

<bundles_post_ra>
// kernel: mlp_forward.1
= control target key start
LH: loop header
LB: loop body
LE: loop exit
PB: predicated region body
PF: predicated region fallthrough
CT: control target
= control target key end

     0   :  { %15 = vsyncpa [#allocation4], 0  ;;  %s2014_s30 = smov [#allocation3]   ;;  %s2249_s0 = inlined_call_operand.vmem [shape: bf16[16,32], index: 0, kind: input, shape index: {}]   ;;  %s2250_s1 = inlined_call_operand.vmem [shape: bf16[32,1024], index: 1, kind: input, shape index: {}]   ;;  %s2251_s2 = inlined_call_operand.vmem [shape: f32[1,1024], index: 2, kind: input, shape index: {}]   ;;  %s2252_s3 = inlined_call_operand.hbm [shape: bf16[1024,256], index: 3, kind: input, shape index: {}]   ;;  %s2253_s4 = inlined_call_operand.vmem [shape: f32[1,256], index: 4, kind: input, shape index: {}]   ;;  %s2254_s5 = inlined_call_operand.vmem [shape: bf16[256,64], index: 5, kind: input, shape index: {}]   ;;  %s2255_s6 = inlined_call_operand.vmem [shape: f32[1,64], index: 6, kind: input, shape index: {}]   ;;  %s2256_s7 = inlined_call_operand.vmem [shape: f32[1,64], index: 7, kind: input, shape index: {}]   ;;  %s2257_s8 = inlined_call_operand.<no memory space> [shape: f32[1], index: 8, kind: input, shape index: {}]   ;;  %s2258_s9 = inlined_call_operand.vmem [shape: f32[1,1,16], index: 9, kind: output, shape index: {}]  }
   0x1   :  { %s27_s10 = sshll.u32 %s2014_s30, 4  ;;  %s1990_s13 = scalar_lea.hbm %s2252_s3, 16384  ;;  %s28_s10 = int_to_ptr.vmem [resolvable:$true] %s27_s10 }
   0x2   :  { %p1991_p0 = scmp.ne.s32.totalorder %s2252_s3, %s1990_s13  ;;  %p1994_p1 = scmp.lt.u32.totalorder %s1990_s13, %s2252_s3 }
   0x4   :  { %p1996_p2 = pnand %p1994_p1, %p1991_p0 }
   0x6   :  { %1999 = shalt.err (!%p1996_p2)
}
   0x7   :  { %s2000_s18 = scalar_lea.vmem %s28_s10, 16384  ;;  %p2005_p4 = scmp.lt.s32.totalorder %s28_s10, %s28_s10 }
   0x8   :  { %p2001_p3 = scmp.ne.s32.totalorder %s28_s10, %s2000_s18  ;;  %p2006_p5 = scmp.lt.s32.totalorder %s2000_s18, %s2000_s18 }
   0xa   :  { %p2007_p6 = por %p2006_p5, %p2005_p4 }
   0xc   :  { %p2008_p7 = pnand %p2007_p6, %p2001_p3 }
   0xe   :  { %2011 = shalt.err (!%p2008_p7)
}
   0xf   :  { %s2015_s19 = smov 128   ;;  %s2016_s20 = smov 8  }
  0x10   :  { %33 = dma.hbm_to_vmem [thread:$0]  %s2252_s3, 16384, %s28_s10, [#allocation4], %s2015_s19, %s2015_s19, %s2016_s20  }
  0x11   :  { %2012 = dma.done.wait [#allocation4], 16384  }
  0x12   :  { %2013 = vsyncadd [#allocation4], 4294950912  ;;  %v2017_v0 = vmov 0   ;;  %v50_v1 = vld [vmem:[%s2250_s1] sm:$0xff]  ;;  %v51_v8 = vld [vmem:[%s2250_s1 + $0x8] sm:$0xff]  ;;  %vm193_vm0 = vcmask 261120  }
  0x13   :  { %229 = vmatprep.mubr.bf16.mxu0 %v2017_v0  ;;  %v54_v2 = vld [vmem:[%s2250_s1 + $0x20] sm:$0xff]  ;;  %v55_v9 = vld [vmem:[%s2250_s1 + $0x28] sm:$0xff]  ;;  %v52_v18 = vld [vmem:[%s2250_s1 + $0x10] sm:$0xff]  ;;  %vm1538_vm1 = vcmask 523264   ;;  %vm1562_vm2 = vcmask 130112   ;;  %vm1565_vm3 = vcmask 122880  }
  0x14   :  { %v58_v3 = vld [vmem:[%s2250_s1 + $0x40] sm:$0xff]  ;;  %v1574_v4 = vcombine.high %v50_v1, %v54_v2  ;;  %v1573_v5 = vcombine.low %v50_v1, %v54_v2  ;;  %v1576_v12 = vcombine.high %v51_v8, %v55_v9  ;;  %v59_v13 = vld [vmem:[%s2250_s1 + $0x48] sm:$0xff]  ;;  %v1575_v17 = vcombine.low %v51_v8, %v55_v9  ;;  %v1785_v19 = vld [vmem:[#allocation3 + $0x14] ss:$8 sps:$4 sm:$0xff]  }
  0x15   :  { %v62_v6 = vld [vmem:[%s2250_s1 + $0x60] sm:$0xff]  ;;  %v63_v14 = vld [vmem:[%s2250_s1 + $0x68] sm:$0xff]  ;;  %v56_v21 = vld [vmem:[%s2250_s1 + $0x30] sm:$0xff] }
  0x16   :  { %v1582_v7 = vcombine.high %v58_v3, %v62_v6  ;;  %197 = vmatprep.subr.bf16.mxu0 %v1574_v4  ;;  %v1581_v10 = vcombine.low %v58_v3, %v62_v6  ;;  %v2102_v11 = vld [vmem:[%s2249_s0] sm:$0xff]   ;;  %v1584_v20 = vcombine.high %v59_v13, %v63_v14  ;;  %v1787_v22 = vld [vmem:[#allocation3 + $0x10] ss:$8 sps:$4 sm:$0xff]   ;;  %v1583_v24 = vcombine.low %v59_v13, %v63_v14  ;;  %v1791_v29 = vld [vmem:[#allocation3 + $0x34] ss:$8 sps:$4 sm:$0xff]  }
  0x17   :  { %198 = vmatpush1.bf16.msra.mxu0 %v1573_v5  ;;  %v1782_v15 = vld [vmem:[#allocation3 + $0x4] ss:$8 sps:$4 sm:$0xff]   ;;  %v1784_v16 = vld [vmem:[#allocation3] ss:$8 sps:$4 sm:$0xff]   ;;  %v1578_v25 = vcombine.high %v52_v18, %v56_v21  ;;  %v60_v26 = vld [vmem:[%s2250_s1 + $0x50] sm:$0xff]  ;;  %v1577_v30 = vcombine.low %v52_v18, %v56_v21 }
  0x18   :  { %199 = vmatprep.subr.bf16.mxu0 %v1582_v7  ;;  %1173 = vmatprep.subr.bf16.mxu1 %v1782_v15  ;;  %v1788_v23 = vld [vmem:[#allocation3 + $0x24] ss:$8 sps:$4 sm:$0xff]   ;;  %v64_v27 = vld [vmem:[%s2250_s1 + $0x70] sm:$0xff]  ;;  %v1790_v28 = vld [vmem:[#allocation3 + $0x20] ss:$8 sps:$4 sm:$0xff]  }
  0x19   :  { %1174 = vmatpush1.bf16.msra.mxu1 %v1784_v16  ;;  %v53_v31 = vld [vmem:[%s2250_s1 + $0x18] sm:$0xff]  ;;  %v1586_v32 = vcombine.high %v60_v26, %v64_v27  ;;  %v1794_v35 = vld [vmem:[#allocation3 + $0x44] ss:$8 sps:$4 sm:$0xff]   ;;  %v1585_v36 = vcombine.low %v60_v26, %v64_v27  ;;  %v1799_v40 = vld [vmem:[#allocation3 + $0x40] ss:$8 sps:$4 sm:$0xff]  }
  0x1a   :  { %1175 = vmatprep.subr.bf16.mxu1 %v1785_v19  ;;  %v57_v33 = vld [vmem:[%s2250_s1 + $0x38] sm:$0xff]  ;;  %v1806_v45 = vld [vmem:[#allocation3 + $0x64] ss:$8 sps:$4 sm:$0xff]   ;;  %v1811_v48 = vld [vmem:[#allocation3 + $0x60] ss:$8 sps:$4 sm:$0xff]  }
  0x1b   :  { %200 = vmatpush1.bf16.msra.mxu0 %v1581_v10  ;;  %v1793_v34 = vld [vmem:[#allocation3 + $0x30] ss:$8 sps:$4 sm:$0xff]   ;;  %v1580_v37 = vcombine.high %v53_v31, %v57_v33  ;;  %v1800_v41 = vld [vmem:[#allocation3 + $0x54] ss:$8 sps:$4 sm:$0xff]   ;;  %v1579_v42 = vcombine.low %v53_v31, %v57_v33  ;;  %v1798_v47 = vld [vmem:[#allocation3 + $0x204] ss:$8 sps:$4 sm:$0xff]  }
  0x1c   :  { %240 = vmatprep.subr.bf16.mxu0 %v1576_v12  ;;  %v61_v38 = vld [vmem:[%s2250_s1 + $0x58] sm:$0xff]  ;;  %v1796_v50 = vld [vmem:[#allocation3 + $0x200] ss:$8 sps:$4 sm:$0xff]   ;;  %v1818_v53 = vld [vmem:[#allocation3 + $0x84] ss:$8 sps:$4 sm:$0xff]  }
  0x1d   :  { %1176 = vmatpush1.bf16.msra.mxu1 %v1787_v22  ;;  %v65_v39 = vld [vmem:[%s2250_s1 + $0x78] sm:$0xff]  ;;  %v1810_v55 = vld [vmem:[#allocation3 + $0x224] ss:$8 sps:$4 sm:$0xff]   ;;  %v1808_v56 = vld [vmem:[#allocation3 + $0x220] ss:$8 sps:$4 sm:$0xff]  }
  0x1e   :  { %1589 = vmatmul.mubr.msk.bf16.vlgmr.msra.gmra.mrb[0].mxu0 %vm193_vm0, %v2102_v11  ;;  %1177 = vmatprep.subr.bf16.mxu1 %v1788_v23  ;;  %v1588_v43 = vcombine.high %v61_v38, %v65_v39  ;;  %v1805_v44 = vld [vmem:[#allocation3 + $0x50] ss:$8 sps:$4 sm:$0xff]   ;;  %v1587_v46 = vcombine.low %v61_v38, %v65_v39  ;;  %v1812_v49 = vld [vmem:[#allocation3 + $0x74] ss:$8 sps:$4 sm:$0xff]   ;;  %v1823_v57 = vld [vmem:[#allocation3 + $0x80] ss:$8 sps:$4 sm:$0xff]  }
  0x1f   :  { %241 = vmatpush1.bf16.msra.mxu0 %v1575_v17  ;;  %272 = vmatprep.mubr.bf16.mxu0 %v2017_v0  ;;  %v1804_v51 = vld [vmem:[#allocation3 + $0x214] ss:$8 sps:$4 sm:$0xff]   ;;  %v1817_v52 = vld [vmem:[#allocation3 + $0x70] ss:$8 sps:$4 sm:$0xff]   ;;  %v1830_v61 = vld [vmem:[#allocation3 + $0xa4] ss:$8 sps:$4 sm:$0xff]  }
  0x20   :  { %242 = vmatprep.subr.bf16.mxu0 %v1584_v20  ;;  %v1802_v54 = vld [vmem:[#allocation3 + $0x210] ss:$8 sps:$4 sm:$0xff]   ;;  %v1824_v58 = vld [vmem:[#allocation3 + $0x94] ss:$8 sps:$4 sm:$0xff]   ;;  %v1822_v63 = vld [vmem:[#allocation3 + $0x244] ss:$8 sps:$4 sm:$0xff]  }
  0x21   :  { %1178 = vmatpush1.bf16.msra.mxu1 %v1790_v28  ;;  %v1816_v59 = vld [vmem:[#allocation3 + $0x234] ss:$8 sps:$4 sm:$0xff]   ;;  %v1829_v60 = vld [vmem:[#allocation3 + $0x90] ss:$8 sps:$4 sm:$0xff]   ;;  %v1820_v2 = vld [vmem:[#allocation3 + $0x240] ss:$8 sps:$4 sm:$0xff]  }
  0x22   :  { %1179 = vmatprep.subr.bf16.mxu1 %v1791_v29  ;;  %v1814_v62 = vld [vmem:[#allocation3 + $0x230] ss:$8 sps:$4 sm:$0xff]   ;;  %v1836_v1 = vld [vmem:[#allocation3 + $0xb4] ss:$8 sps:$4 sm:$0xff]   ;;  %v1842_v5 = vld [vmem:[#allocation3 + $0xc4] ss:$8 sps:$4 sm:$0xff]  }
  0x23   :  { %243 = vmatpush1.bf16.msra.mxu0 %v1583_v24  ;;  %v1828_v3 = vld [vmem:[#allocation3 + $0x254] ss:$8 sps:$4 sm:$0xff]   ;;  %v1841_v4 = vld [vmem:[#allocation3 + $0xb0] ss:$8 sps:$4 sm:$0xff]   ;;  %v1834_v7 = vld [vmem:[#allocation3 + $0x264] ss:$8 sps:$4 sm:$0xff]  }
  0x24   :  { %283 = vmatprep.subr.bf16.mxu0 %v1578_v25  ;;  %v1826_v6 = vld [vmem:[#allocation3 + $0x250] ss:$8 sps:$4 sm:$0xff]   ;;  %v1847_v8 = vld [vmem:[#allocation3 + $0xc0] ss:$8 sps:$4 sm:$0xff]   ;;  %v1848_v9 = vld [vmem:[#allocation3 + $0xd4] ss:$8 sps:$4 sm:$0xff]  }
  0x25   :  { %1180 = vmatpush1.bf16.msra.mxu1 %v1793_v34  ;;  %v1832_v10 = vld [vmem:[#allocation3 + $0x260] ss:$8 sps:$4 sm:$0xff]   ;;  %v1853_v12 = vld [vmem:[#allocation3 + $0xd0] ss:$8 sps:$4 sm:$0xff]   ;;  %v1846_v14 = vld [vmem:[#allocation3 + $0x284] ss:$8 sps:$4 sm:$0xff]  }
  0x26   :  { %1590 = vmatmul.mubr.msk.bf16.vlgmr.msra.gmra.mrb[4].mxu0 %vm193_vm0, %v2102_v11  ;;  %1181 = vmatprep.subr.bf16.mxu1 %v1794_v35  ;;  %v1838_v13 = vld [vmem:[#allocation3 + $0x270] ss:$8 sps:$4 sm:$0xff]   ;;  %v1844_v15 = vld [vmem:[#allocation3 + $0x280] ss:$8 sps:$4 sm:$0xff]   ;;  %v1852_v16 = vld [vmem:[#allocation3 + $0x294] ss:$8 sps:$4 sm:$0xff]  }
  0x27   :  { %284 = vmatpush1.bf16.msra.mxu0 %v1577_v30  ;;  %315 = vmatprep.mubr.bf16.mxu0 %v2017_v0  ;;  %v1850_v17 = vld [vmem:[#allocation3 + $0x290] ss:$8 sps:$4 sm:$0xff]   ;;  %v1854_v18 = vld [vmem:[#allocation3 + $0xe4] ss:$8 sps:$4 sm:$0xff]   ;;  %v1856_v20 = vld [vmem:[#allocation3 + $0x2a0] ss:$8 sps:$4 sm:$0xff]  }
  0x28   :  { %285 = vmatprep.subr.bf16.mxu0 %v1586_v32  ;;  %v1858_v19 = vld [vmem:[#allocation3 + $0x2a4] ss:$8 sps:$4 sm:$0xff]   ;;  %v1859_v21 = vld [vmem:[#allocation3 + $0xe0] ss:$8 sps:$4 sm:$0xff]   ;;  %v1860_v22 = vld [vmem:[#allocation3 + $0xf4] ss:$8 sps:$4 sm:$0xff]  }
  0x29   :  { %1182 = vmatpush1.bf16.msra.mxu1 %v1799_v40  ;;  %v1864_v23 = vld [vmem:[#allocation3 + $0x2b4] ss:$8 sps:$4 sm:$0xff]   ;;  %v1862_v24 = vld [vmem:[#allocation3 + $0x2b0] ss:$8 sps:$4 sm:$0xff]   ;;  %v1868_v26 = vld [vmem:[#allocation3 + $0x104] ss:$8 sps:$4 sm:$0xff]  }
  0x2a   :  { %1183 = vmatprep.subr.bf16.mxu1 %v1800_v41  ;;  %v1865_v25 = vld [vmem:[#allocation3 + $0xf0] ss:$8 sps:$4 sm:$0xff]   ;;  %v1871_v27 = vld [vmem:[#allocation3 + $0x2c4] ss:$8 sps:$4 sm:$0xff]   ;;  %v1869_v28 = vld [vmem:[#allocation3 + $0x2c0] ss:$8 sps:$4 sm:$0xff]  }
  0x2b   :  { %286 = vmatpush1.bf16.msra.mxu0 %v1585_v36  ;;  %v1877_v29 = vld [vmem:[#allocation3 + $0x2d4] ss:$8 sps:$4 sm:$0xff]   ;;  %v1875_v30 = vld [vmem:[#allocation3 + $0x2d0] ss:$8 sps:$4 sm:$0xff]   ;;  %v1883_v31 = vld [vmem:[#allocation3 + $0x2e4] ss:$8 sps:$4 sm:$0xff]   ;;  %v68_v36 = vlaneseq }
  0x2c   :  { %326 = vmatprep.subr.bf16.mxu0 %v1580_v37  ;;  %v1881_v32 = vld [vmem:[#allocation3 + $0x2e0] ss:$8 sps:$4 sm:$0xff]   ;;  %v1889_v33 = vld [vmem:[#allocation3 + $0x2f4] ss:$8 sps:$4 sm:$0xff]   ;;  %v1887_v34 = vld [vmem:[#allocation3 + $0x2f0] ss:$8 sps:$4 sm:$0xff]  }
  0x2d   :  { %1184 = vmatpush1.bf16.msra.mxu1 %v1805_v44  ;;  %v1895_v35 = vld [vmem:[#allocation3 + $0x304] ss:$8 sps:$4 sm:$0xff]   ;;  %v2146_v37 = vshrl.u32 %v68_v36, 7 }
  0x2e   :  { %1591 = vmatmul.mubr.msk.bf16.vlgmr.msra.gmra.mrb[8].mxu0 %vm193_vm0, %v2102_v11  ;;  %1185 = vmatprep.subr.bf16.mxu1 %v1806_v45  ;;  %v2152_v39 = vld [vmem:[%s2251_s2] sm:$0xff] }
  0x2f   :  { %327 = vmatpush1.bf16.msra.mxu0 %v1579_v42  ;;  %358 = vmatprep.mubr.bf16.mxu0 %v2017_v0  ;;  %v1835_v0 = vld [vmem:[#allocation3 + $0xa0] ss:$8 sps:$4 sm:$0xff]   ;;  %v70_v38 = vsub.s32 0, %v2146_v37  ;;  %v74_v40 = vsub.s32 1, %v2146_v37 }
  0x30   :  { %328 = vmatprep.subr.bf16.mxu0 %v1588_v43 }
  0x31   :  { %1186 = vmatpush1.bf16.msra.mxu1 %v1811_v48  ;;  %v71_v41 = vrot.slane %v2152_v39, %v70_v38  ;;  %v75_v42 = vrot.slane %v2152_v39, %v74_v40 }
  0x32   :  { %1187 = vmatprep.subr.bf16.mxu1 %v1812_v49  ;;  %v82_v49 = vsub.s32 3, %v2146_v37 }
  0x33   :  { %329 = vmatpush1.bf16.msra.mxu0 %v1587_v46  ;;  %v78_v46 = vsub.s32 2, %v2146_v37 }
  0x34   :  { %1259 = vmatprep.subr.bf16.mxu0 %v1798_v47 }
  0x35   :  { %1188 = vmatpush1.bf16.msra.mxu1 %v1817_v52 }
  0x36   :  { %1592 = vmatmul.mubr.msk.bf16.vlgmr.msra.gmra.mrb[12].mxu0 %vm193_vm0, %v2102_v11  ;;  %1189 = vmatprep.subr.bf16.mxu1 %v1818_v53  ;;  %v1840_v11 = vld [vmem:[#allocation3 + $0x274] ss:$8 sps:$4 sm:$0xff]  }
  0x37   :  { %1260 = vmatpush1.bf16.msra.mxu0 %v1796_v50 }
  0x38   :  { %1261 = vmatprep.subr.bf16.mxu0 %v1804_v51 }
  0x39   :  { %1190 = vmatpush1.bf16.msra.mxu1 %v1823_v57 }
  0x3a   :  { %1191 = vmatprep.subr.bf16.mxu1 %v1824_v58  ;;  %v83_v58 = vrot.slane %v2152_v39, %v82_v49  ;;  %v1898_v49 = vld [vmem:[#allocation3 + $0x154] ss:$8 sps:$4 sm:$0xff]  }
  0x3b   :  { %1262 = vmatpush1.bf16.msra.mxu0 %v1802_v54 }
  0x3c   :  { %1263 = vmatprep.subr.bf16.mxu0 %v1810_v55  ;;  %v79_v55 = vrot.slane %v2152_v39, %v78_v46  ;;  %v1890_v46 = vld [vmem:[#allocation3 + $0x140] ss:$8 sps:$4 sm:$0xff]  }
  0x3d   :  { %1192 = vmatpush1.bf16.msra.mxu1 %v1829_v60 }
  0x3e   :  { %1193 = vmatprep.subr.bf16.mxu1 %v1830_v61 }
  0x3f   :  { %1264 = vmatpush1.bf16.msra.mxu0 %v1808_v56 }
  0x40   :  { %1265 = vmatprep.subr.bf16.mxu0 %v1816_v59 }
  0x41   :  { %1194 = vmatpush1.bf16.msra.mxu1 %v1835_v0 }
  0x42   :  { %1195 = vmatprep.subr.bf16.mxu1 %v1836_v1  ;;  %v1874_v1 = vld [vmem:[#allocation3 + $0x114] ss:$8 sps:$4 sm:$0xff]  }
  0x43   :  { %1266 = vmatpush1.bf16.msra.mxu0 %v1814_v62  ;;  %v1866_v62 = vld [vmem:[#allocation3 + $0x100] ss:$8 sps:$4 sm:$0xff]  }
  0x44   :  { %1267 = vmatprep.subr.bf16.mxu0 %v1822_v63 }
  0x45   :  { %1196 = vmatpush1.bf16.msra.mxu1 %v1841_v4 }
  0x46   :  { %1197 = vmatprep.subr.bf16.mxu1 %v1842_v5  ;;  %v90_v5 = vsub.s32 5, %v2146_v37 }
  0x47   :  { %1268 = vmatpush1.bf16.msra.mxu0 %v1820_v2  ;;  %v86_v2 = vsub.s32 4, %v2146_v37 }
  0x48   :  { %1269 = vmatprep.subr.bf16.mxu0 %v1828_v3 }
  0x49   :  { %1198 = vmatpush1.bf16.msra.mxu1 %v1847_v8 }
  0x4a   :  { %1199 = vmatprep.subr.bf16.mxu1 %v1848_v9  ;;  %v1872_v9 = vld [vmem:[#allocation3 + $0x110] ss:$8 sps:$4 sm:$0xff]  }
  0x4b   :  { %1270 = vmatpush1.bf16.msra.mxu0 %v1826_v6 }
  0x4c   :  { %1271 = vmatprep.subr.bf16.mxu0 %v1834_v7 }
  0x4d   :  { %1200 = vmatpush1.bf16.msra.mxu1 %v1853_v12  ;;  %v87_v12 = vrot.slane %v2152_v39, %v86_v2  ;;  %v1902_v2 = vld [vmem:[#allocation3 + $0x160] ss:$8 sps:$4 sm:$0xff]  }
  0x4e   :  { %1201 = vmatprep.subr.bf16.mxu1 %v1854_v18 }
  0x4f   :  { %1272 = vmatpush1.bf16.msra.mxu0 %v1832_v10 }
  0x50   :  { %1273 = vmatprep.subr.bf16.mxu0 %v1840_v11 }
  0x51   :  { %1202 = vmatpush1.bf16.msra.mxu1 %v1859_v21 }
  0x52   :  { %1203 = vmatprep.subr.bf16.mxu1 %v1860_v22 }
  0x53   :  { %1274 = vmatpush1.bf16.msra.mxu0 %v1838_v13  ;;  %v1880_v13 = vld [vmem:[#allocation3 + $0x124] ss:$8 sps:$4 sm:$0xff]  }
  0x54   :  { %1275 = vmatprep.subr.bf16.mxu0 %v1846_v14 }
  0x55   :  { %1204 = vmatpush1.bf16.msra.mxu1 %v1865_v25 }
  0x56   :  { %1216 = vmatprep.subr.bf16.mxu1 %v1868_v26 }
  0x57   :  { %1276 = vmatpush1.bf16.msra.mxu0 %v1844_v15 }
  0x58   :  { %1277 = vmatprep.subr.bf16.mxu0 %v1852_v16  ;;  %v91_v16 = vrot.slane %v2152_v39, %v90_v5  ;;  %v1910_v5 = vld [vmem:[#allocation3 + $0x174] ss:$8 sps:$4 sm:$0xff]  }
  0x5b   :  { %1278 = vmatpush1.bf16.msra.mxu0 %v1850_v17 }
  0x5c   :  { %1279 = vmatprep.subr.bf16.mxu0 %v1858_v19 }
  0x5f   :  { %1280 = vmatpush1.bf16.msra.mxu0 %v1856_v20  ;;  %v1878_v20 = vld [vmem:[#allocation3 + $0x120] ss:$8 sps:$4 sm:$0xff]  }
  0x60   :  { %1281 = vmatprep.subr.bf16.mxu0 %v1864_v23  ;;  %v1886_v23 = vld [vmem:[#allocation3 + $0x134] ss:$8 sps:$4 sm:$0xff]  }
  0x63   :  { %1282 = vmatpush1.bf16.msra.mxu0 %v1862_v24  ;;  %v94_v24 = vsub.s32 6, %v2146_v37 }
  0x64   :  { %1283 = vmatprep.subr.bf16.mxu0 %v1871_v27  ;;  %v98_v27 = vsub.s32 7, %v2146_v37 }
  0x67   :  { %1284 = vmatpush1.bf16.msra.mxu0 %v1869_v28 }
  0x68   :  { %1285 = vmatprep.subr.bf16.mxu0 %v1877_v29 }
  0x6b   :  { %1286 = vmatpush1.bf16.msra.mxu0 %v1875_v30 }
  0x6c   :  { %1287 = vmatprep.subr.bf16.mxu0 %v1883_v31  ;;  %v1884_v31 = vld [vmem:[#allocation3 + $0x130] ss:$8 sps:$4 sm:$0xff]  }
  0x6f   :  { %1288 = vmatpush1.bf16.msra.mxu0 %v1881_v32 }
  0x70   :  { %1289 = vmatprep.subr.bf16.mxu0 %v1889_v33 }
  0x73   :  { %1290 = vmatpush1.bf16.msra.mxu0 %v1887_v34  ;;  %v1892_v34 = vld [vmem:[#allocation3 + $0x144] ss:$8 sps:$4 sm:$0xff]  }
  0x74   :  { %1302 = vmatprep.subr.bf16.mxu0 %v1895_v35  ;;  %v95_v35 = vrot.slane %v2152_v39, %v94_v24  ;;  %v1932_v24 = vld [vmem:[#allocation3 + $0x1b0] ss:$8 sps:$4 sm:$0xff]  }
  0xf1   :  { %v231_v43 = vpop.f32.mrb[0].mxu0 }
  0xf2   :  { %v232_v44 = vadd.f32 %v231_v43, %v71_v41  ;;  %v233_v45 = vpop.f32.mrb[1].mxu0  ;;  %v99_v43 = vrot.slane %v2152_v39, %v98_v27  ;;  %v1896_v39 = vld [vmem:[#allocation3 + $0x150] ss:$8 sps:$4 sm:$0xff]   ;;  %v1943_v27 = vld [vmem:[#allocation3 + $0x384] ss:$8 sps:$4 sm:$0xff]  }
  0xf3   :  { %v234_v47 = vadd.f32 %v233_v45, %v75_v42  ;;  %v235_v48 = vpop.f32.mrb[2].mxu0 }
  0xf4   :  { %v236_v50 = vadd.f32 %v235_v48, %v71_v41  ;;  %v237_v51 = vpop.f32.mrb[3].mxu0  ;;  %v369_v53 = vmax.f32 %v232_v44, 0.0 }
  0xf5   :  { %v238_v52 = vadd.f32 %v237_v51, %v75_v42  ;;  %v370_v56 = vmax.f32 %v234_v47, 0.0  ;;  %v1893_v47 = vld [vmem:[#allocation3 + $0x300] ss:$8 sps:$4 sm:$0xff]  }
  0xf6   :  { %v377_v54 = vmax.f32 %v236_v50, 0.0  ;;  %v1901_v50 = vld [vmem:[#allocation3 + $0x314] ss:$8 sps:$4 sm:$0xff]  }
  0xf7   :  { %v378_v57 = vmax.f32 %v238_v52, 0.0 }
  0xf8   :  { %v385_v59 = vpack.c.bf16 %v377_v54, %v369_v53 }
  0xf9   :  { %v274_v60 = vpop.f32.mrb[4].mxu0  ;;  %v386_v61 = vpack.c.bf16 %v378_v57, %v370_v56 }
  0xfa   :  { %v275_v63 = vadd.f32 %v274_v60, %v79_v55  ;;  %v276_v0 = vpop.f32.mrb[5].mxu0 }
  0xfb   :  { %v277_v3 = vadd.f32 %v276_v0, %v83_v58  ;;  %v278_v4 = vpop.f32.mrb[6].mxu0  ;;  %1205 = vmatprep.mubr.bf16.mxu1 %v386_v61  ;;  %v1904_v61 = vld [vmem:[#allocation3 + $0x164] ss:$8 sps:$4 sm:$0xff]  }
  0xfc   :  { %v279_v6 = vadd.f32 %v278_v4, %v79_v55  ;;  %v280_v7 = vpop.f32.mrb[7].mxu0  ;;  %1206 = vmatmul.mubr.bf16.vlgmr.msra.gmra.mrb[0].mxu1 %v385_v59  ;;  %v371_v10 = vmax.f32 %v275_v63, 0.0 }
  0xfd   :  { %v281_v8 = vadd.f32 %v280_v7, %v83_v58  ;;  %1217 = vmatpush1.bf16.msra.mxu1 %v1866_v62  ;;  %v372_v14 = vmax.f32 %v277_v3, 0.0  ;;  %v1899_v58 = vld [vmem:[#allocation3 + $0x310] ss:$8 sps:$4 sm:$0xff]   ;;  %v1907_v62 = vld [vmem:[#allocation3 + $0x324] ss:$8 sps:$4 sm:$0xff]  }
  0xfe   :  { %v379_v11 = vmax.f32 %v279_v6, 0.0  ;;  %1218 = vmatprep.subr.bf16.mxu1 %v1874_v1  ;;  %v1905_v3 = vld [vmem:[#allocation3 + $0x320] ss:$8 sps:$4 sm:$0xff]   ;;  %v1913_v6 = vld [vmem:[#allocation3 + $0x334] ss:$8 sps:$4 sm:$0xff]  }
  0xff   :  { %v380_v15 = vmax.f32 %v281_v8, 0.0  ;;  %v1908_v7 = vld [vmem:[#allocation3 + $0x170] ss:$8 sps:$4 sm:$0xff]  }
 0x100   :  { %v2169_v17 = vpack.c.bf16 %v379_v11, %v371_v10  ;;  %v1911_v8 = vld [vmem:[#allocation3 + $0x330] ss:$8 sps:$4 sm:$0xff]   ;;  %v1919_v10 = vld [vmem:[#allocation3 + $0x344] ss:$8 sps:$4 sm:$0xff]   ;;  %v1914_v11 = vld [vmem:[#allocation3 + $0x180] ss:$8 sps:$4 sm:$0xff]  }
 0x101   :  { %v388_v18 = vpack.c.bf16 %v380_v15, %v372_v14  ;;  %1219 = vmatpush1.bf16.msra.mxu1 %v1872_v9  ;;  %v317_v19 = vpop.f32.mrb[8].mxu0  ;;  %v1916_v9 = vld [vmem:[#allocation3 + $0x184] ss:$8 sps:$4 sm:$0xff]   ;;  %v1925_v14 = vld [vmem:[#allocation3 + $0x354] ss:$8 sps:$4 sm:$0xff]  }
 0x102   :  { %v318_v21 = vadd.f32 %v317_v19, %v87_v12  ;;  %v319_v22 = vpop.f32.mrb[9].mxu0  ;;  %1220 = vmatprep.subr.bf16.mxu1 %v1880_v13  ;;  %v1922_v13 = vld [vmem:[#allocation3 + $0x194] ss:$8 sps:$4 sm:$0xff]   ;;  %v1920_v15 = vld [vmem:[#allocation3 + $0x190] ss:$8 sps:$4 sm:$0xff]  }
 0x103   :  { %v320_v25 = vadd.f32 %v319_v22, %v91_v16  ;;  %v321_v26 = vpop.f32.mrb[10].mxu0  ;;  %1248 = vmatprep.mubr.bf16.mxu1 %v388_v18  ;;  %v1928_v18 = vld [vmem:[#allocation3 + $0x1a4] ss:$8 sps:$4 sm:$0xff]   ;;  %v1934_v22 = vld [vmem:[#allocation3 + $0x1b4] ss:$8 sps:$4 sm:$0xff]  }
 0x104   :  { %v322_v28 = vadd.f32 %v321_v26, %v87_v12  ;;  %v323_v29 = vpop.f32.mrb[11].mxu0  ;;  %v373_v32 = vmax.f32 %v318_v21, 0.0  ;;  %v1917_v12 = vld [vmem:[#allocation3 + $0x340] ss:$8 sps:$4 sm:$0xff]   ;;  %v1931_v19 = vld [vmem:[#allocation3 + $0x364] ss:$8 sps:$4 sm:$0xff]  }
 0x105   :  { %v324_v30 = vadd.f32 %v323_v29, %v91_v16  ;;  %1221 = vmatpush1.bf16.msra.mxu1 %v1878_v20  ;;  %v374_v41 = vmax.f32 %v320_v25, 0.0  ;;  %v1923_v16 = vld [vmem:[#allocation3 + $0x350] ss:$8 sps:$4 sm:$0xff]   ;;  %v1926_v20 = vld [vmem:[#allocation3 + $0x1a0] ss:$8 sps:$4 sm:$0xff]  }
 0x106   :  { %v381_v33 = vmax.f32 %v322_v28, 0.0  ;;  %1222 = vmatprep.subr.bf16.mxu1 %v1886_v23  ;;  %v1929_v21 = vld [vmem:[#allocation3 + $0x360] ss:$8 sps:$4 sm:$0xff]   ;;  %v1937_v23 = vld [vmem:[#allocation3 + $0x374] ss:$8 sps:$4 sm:$0xff]  }
 0x107   :  { %v382_v42 = vmax.f32 %v324_v30, 0.0  ;;  %v1935_v25 = vld [vmem:[#allocation3 + $0x370] ss:$8 sps:$4 sm:$0xff]   ;;  %v1940_v26 = vld [vmem:[#allocation3 + $0x1c4] ss:$8 sps:$4 sm:$0xff]  }
 0x108   :  { %v389_v44 = vpack.c.bf16 %v381_v33, %v373_v32  ;;  %v1938_v28 = vld [vmem:[#allocation3 + $0x1c0] ss:$8 sps:$4 sm:$0xff]   ;;  %v1946_v30 = vld [vmem:[#allocation3 + $0x1d4] ss:$8 sps:$4 sm:$0xff]   ;;  %v1944_v32 = vld [vmem:[#allocation3 + $0x1d0] ss:$8 sps:$4 sm:$0xff]  }
 0x109   :  { %v390_v45 = vpack.c.bf16 %v382_v42, %v374_v41  ;;  %1223 = vmatpush1.bf16.msra.mxu1 %v1884_v31  ;;  %v360_v48 = vpop.f32.mrb[12].mxu0  ;;  %v1941_v29 = vld [vmem:[#allocation3 + $0x380] ss:$8 sps:$4 sm:$0xff]   ;;  %v1949_v31 = vld [vmem:[#allocation3 + $0x394] ss:$8 sps:$4 sm:$0xff]  }
 0x10a   :  { %1224 = vmatprep.subr.bf16.mxu1 %v1892_v34  ;;  %v361_v51 = vadd.f32 %v360_v48, %v95_v35  ;;  %v362_v52 = vpop.f32.mrb[13].mxu0  ;;  %v1947_v33 = vld [vmem:[#allocation3 + $0x390] ss:$8 sps:$4 sm:$0xff]   ;;  %v1952_v34 = vld [vmem:[#allocation3 + $0x1e4] ss:$8 sps:$4 sm:$0xff]  }
 0x10b   :  { %1291 = vmatprep.mubr.bf16.mxu0 %v390_v45  ;;  %v363_v53 = vadd.f32 %v362_v52, %v99_v43  ;;  %v364_v54 = vpop.f32.mrb[14].mxu0  ;;  %v1950_v41 = vld [vmem:[#allocation3 + $0x1e0] ss:$8 sps:$4 sm:$0xff]   ;;  %v1956_v45 = vld [vmem:[#allocation3 + $0x1f0] ss:$8 sps:$4 sm:$0xff]  }
 0x10c   :  { %1292 = vmatmul.mubr.bf16.vlgmr.msra.gmra.mrb[16].mxu0 %v389_v44  ;;  %v375_v55 = vmax.f32 %v361_v51, 0.0  ;;  %v365_v56 = vadd.f32 %v364_v54, %v95_v35  ;;  %v366_v57 = vpop.f32.mrb[15].mxu0  ;;  %v1955_v35 = vld [vmem:[#allocation3 + $0x3a4] ss:$8 sps:$4 sm:$0xff]   ;;  %v1953_v42 = vld [vmem:[#allocation3 + $0x3a0] ss:$8 sps:$4 sm:$0xff]  }
 0x10d   :  { %1225 = vmatpush1.bf16.msra.mxu1 %v1890_v46  ;;  %1303 = vmatpush1.bf16.msra.mxu0 %v1893_v47  ;;  %v376_v59 = vmax.f32 %v363_v53, 0.0  ;;  %v367_v60 = vadd.f32 %v366_v57, %v99_v43  ;;  %v1958_v43 = vld [vmem:[#allocation3 + $0x1f4] ss:$8 sps:$4 sm:$0xff]   ;;  %v1959_v46 = vld [vmem:[#allocation3 + $0x3b0] ss:$8 sps:$4 sm:$0xff]   ;;  %v1974_v48 = vld [vmem:[%s2254_s5 + $0x40] sm:$0xff]  }
 0x10e   :  { %1226 = vmatprep.subr.bf16.mxu1 %v1898_v49  ;;  %1304 = vmatprep.subr.bf16.mxu0 %v1901_v50  ;;  %v383_v63 = vmax.f32 %v365_v56, 0.0  ;;  %v1961_v44 = vld [vmem:[#allocation3 + $0x3b4] ss:$8 sps:$4 sm:$0xff]   ;;  %v1964_v47 = vld [vmem:[#allocation3 + $0x3c4] ss:$8 sps:$4 sm:$0xff]  }
 0x10f   :  { %v384_v0 = vmax.f32 %v367_v60, 0.0  ;;  %v1962_v49 = vld [vmem:[#allocation3 + $0x3c0] ss:$8 sps:$4 sm:$0xff]   ;;  %v1967_v51 = vld [vmem:[#allocation3 + $0x3d4] ss:$8 sps:$4 sm:$0xff]  }
 0x110   :  { %v2175_v1 = vpack.c.bf16 %v383_v63, %v375_v55  ;;  %v1975_v50 = vld [vmem:[%s2254_s5] sm:$0xff]   ;;  %v1976_v52 = vld [vmem:[%s2254_s5 + $0x48] sm:$0xff]   ;;  %v1965_v53 = vld [vmem:[#allocation3 + $0x3d0] ss:$8 sps:$4 sm:$0xff]  }
 0x111   :  { %1227 = vmatpush1.bf16.msra.mxu1 %v1896_v39  ;;  %1305 = vmatpush1.bf16.msra.mxu0 %v1899_v58  ;;  %v392_v4 = vpack.c.bf16 %v384_v0, %v376_v59  ;;  %v1970_v54 = vld [vmem:[#allocation3 + $0x3e4] ss:$8 sps:$4 sm:$0xff]   ;;  %v1968_v55 = vld [vmem:[#allocation3 + $0x3e0] ss:$8 sps:$4 sm:$0xff]   ;;  %v1973_v56 = vld [vmem:[#allocation3 + $0x3f4] ss:$8 sps:$4 sm:$0xff]  }
 0x112   :  { %1228 = vmatprep.subr.bf16.mxu1 %v1904_v61  ;;  %1306 = vmatprep.subr.bf16.mxu0 %v1907_v62  ;;  %v1971_v57 = vld [vmem:[#allocation3 + $0x3f0] ss:$8 sps:$4 sm:$0xff]   ;;  %v1982_v61 = vld [vmem:[%s2254_s5 + $0x60] sm:$0xff]   ;;  %v1984_v63 = vld [vmem:[%s2254_s5 + $0x68] sm:$0xff]  }
 0x113   :  { %1334 = vmatprep.mubr.bf16.mxu0 %v392_v4  ;;  %v1978_v39 = vld [vmem:[%s2254_s5 + $0x50] sm:$0xff]   ;;  %v1980_v59 = vld [vmem:[%s2254_s5 + $0x58] sm:$0xff]   ;;  %v1983_v62 = vld [vmem:[%s2254_s5 + $0x20] sm:$0xff]  }
 0x114   :  { %v1979_v58 = vld [vmem:[%s2254_s5 + $0x10] sm:$0xff]   ;;  %v1981_v60 = vld [vmem:[%s2254_s5 + $0x18] sm:$0xff]   ;;  %v1985_v0 = vld [vmem:[%s2254_s5 + $0x28] sm:$0xff]  }
 0x115   :  { %1229 = vmatpush1.bf16.msra.mxu1 %v1902_v2  ;;  %1307 = vmatpush1.bf16.msra.mxu0 %v1905_v3  ;;  %v1987_v2 = vld [vmem:[%s2254_s5 + $0x30] sm:$0xff]   ;;  %v1988_v3 = vld [vmem:[%s2254_s5 + $0x78] sm:$0xff]  }
 0x116   :  { %1230 = vmatprep.subr.bf16.mxu1 %v1910_v5  ;;  %1308 = vmatprep.subr.bf16.mxu0 %v1913_v6  ;;  %v1989_v4 = vld [vmem:[%s2254_s5 + $0x38] sm:$0xff]  }
 0x119   :  { %1231 = vmatpush1.bf16.msra.mxu1 %v1908_v7  ;;  %1309 = vmatpush1.bf16.msra.mxu0 %v1911_v8 }
 0x11a   :  { %1232 = vmatprep.subr.bf16.mxu1 %v1916_v9  ;;  %1310 = vmatprep.subr.bf16.mxu0 %v1919_v10  ;;  %v521_v9 = vld [vmem:[%s2253_s4] sm:$0x3] }
 0x11b   :  { %v526_v10 = vrot.slane %v521_v9, %v70_v38 }
 0x11d   :  { %1233 = vmatpush1.bf16.msra.mxu1 %v1914_v11  ;;  %1311 = vmatpush1.bf16.msra.mxu0 %v1917_v12  ;;  %v530_v11 = vrot.slane %v521_v9, %v74_v40 }
 0x11e   :  { %1234 = vmatprep.subr.bf16.mxu1 %v1922_v13  ;;  %1312 = vmatprep.subr.bf16.mxu0 %v1925_v14 }
 0x121   :  { %1235 = vmatpush1.bf16.msra.mxu1 %v1920_v15  ;;  %1313 = vmatpush1.bf16.msra.mxu0 %v1923_v16 }
 0x122   :  { %1236 = vmatprep.subr.bf16.mxu1 %v1928_v18  ;;  %1314 = vmatprep.subr.bf16.mxu0 %v1931_v19 }
 0x125   :  { %1237 = vmatpush1.bf16.msra.mxu1 %v1926_v20  ;;  %1315 = vmatpush1.bf16.msra.mxu0 %v1929_v21 }
 0x126   :  { %1238 = vmatprep.subr.bf16.mxu1 %v1934_v22  ;;  %1316 = vmatprep.subr.bf16.mxu0 %v1937_v23 }
 0x129   :  { %1239 = vmatpush1.bf16.msra.mxu1 %v1932_v24  ;;  %1317 = vmatpush1.bf16.msra.mxu0 %v1935_v25 }
 0x12a   :  { %1240 = vmatprep.subr.bf16.mxu1 %v1940_v26  ;;  %1318 = vmatprep.subr.bf16.mxu0 %v1943_v27 }
 0x12d   :  { %1241 = vmatpush1.bf16.msra.mxu1 %v1938_v28  ;;  %1319 = vmatpush1.bf16.msra.mxu0 %v1941_v29 }
 0x12e   :  { %1242 = vmatprep.subr.bf16.mxu1 %v1946_v30  ;;  %1320 = vmatprep.subr.bf16.mxu0 %v1949_v31  ;;  %v1721_v30 = vld [vmem:[%s2255_s6] ss:$0 sm:$0xff] }
 0x131   :  { %1243 = vmatpush1.bf16.msra.mxu1 %v1944_v32  ;;  %1321 = vmatpush1.bf16.msra.mxu0 %v1947_v33 }
 0x132   :  { %1244 = vmatprep.subr.bf16.mxu1 %v1952_v34  ;;  %1322 = vmatprep.subr.bf16.mxu0 %v1955_v35 }
 0x135   :  { %1245 = vmatpush1.bf16.msra.mxu1 %v1950_v41  ;;  %1323 = vmatpush1.bf16.msra.mxu0 %v1953_v42  ;;  %v1738_v42 = vld [vmem:[%s2256_s7] ss:$0 sm:$0xff] }
 0x136   :  { %1246 = vmatprep.subr.bf16.mxu1 %v1958_v43  ;;  %1324 = vmatprep.subr.bf16.mxu0 %v1961_v44 }
 0x139   :  { %1247 = vmatpush1.bf16.msra.mxu1 %v1956_v45  ;;  %1325 = vmatpush1.bf16.msra.mxu0 %v1959_v46 }
 0x13a   :  { %1326 = vmatprep.subr.bf16.mxu0 %v1964_v47  ;;  %1739 = vmatprep.subr.bf16.mxu1 %v1974_v48 }
 0x13c   :  { %1249 = vmatmul.mubr.bf16.vlgmr.msra.gmra.mrb[0].mxu1 %v2169_v17  ;;  %v1977_v17 = vld [vmem:[%s2254_s5 + $0x8] sm:$0xff]  }
 0x13d   :  { %1327 = vmatpush1.bf16.msra.mxu0 %v1962_v49  ;;  %1740 = vmatpush3.bf16.msra.mxu1 %v1975_v50  ;;  %v1552_v50 = vand.u32 127, %v68_v36 }
 0x13e   :  { %1328 = vmatprep.subr.bf16.mxu0 %v1967_v51  ;;  %1741 = vmatprep.subr.bf16.mxu1 %v1976_v52  ;;  %v1546_v52 = vstv %s2257_s8 }
 0x13f   :  { %v1557_v51 = vadd.s32 4294967288, %v1552_v50 }
 0x141   :  { %1329 = vmatpush1.bf16.msra.mxu0 %v1965_v53  ;;  %1742 = vmatpush3.bf16.msra.mxu1 %v1977_v17 }
 0x142   :  { %1330 = vmatprep.subr.bf16.mxu0 %v1970_v54  ;;  %1743 = vmatprep.subr.bf16.mxu1 %v1978_v39  ;;  %v1555_v54 = vsub.s32 %v1552_v50, %v2146_v37 }
 0x145   :  { %1331 = vmatpush1.bf16.msra.mxu0 %v1968_v55  ;;  %1744 = vmatpush3.bf16.msra.mxu1 %v1979_v58 }
 0x146   :  { %1332 = vmatprep.subr.bf16.mxu0 %v1973_v56  ;;  %1745 = vmatprep.subr.bf16.mxu1 %v1980_v59  ;;  %v1560_v56 = vsub.s32 %v1557_v51, %v2146_v37 }
 0x149   :  { %1333 = vmatpush1.bf16.msra.mxu0 %v1971_v57  ;;  %1746 = vmatpush3.bf16.msra.mxu1 %v1981_v60 }
 0x14a   :  { %1747 = vmatprep.subr.bf16.mxu1 %v1982_v61 }
 0x14c   :  { %1335 = vmatmul.mubr.bf16.vlgmr.msra.gmra.mrb[16].mxu0 %v2175_v1  ;;  %v1986_v1 = vld [vmem:[%s2254_s5 + $0x70] sm:$0xff]  }
 0x14d   :  { %1748 = vmatpush3.bf16.msra.mxu1 %v1983_v62 }
 0x14e   :  { %1749 = vmatprep.subr.bf16.mxu1 %v1984_v63 }
 0x151   :  { %1750 = vmatpush3.bf16.msra.mxu1 %v1985_v0 }
 0x152   :  { %1751 = vmatprep.subr.bf16.mxu1 %v1986_v1 }
 0x155   :  { %1752 = vmatpush3.bf16.msra.mxu1 %v1987_v2 }
 0x156   :  { %1753 = vmatprep.subr.bf16.mxu1 %v1988_v3 }
 0x159   :  { %1754 = vmatpush3.bf16.msra.mxu1 %v1989_v4 }
 0x20f   :  { %v1250_v5 = vpop.f32.mrb[0].mxu1 }
 0x210   :  { %v1252_v6 = vpop.f32.mrb[1].mxu1  ;;  %v1761_v12 = vadd.f32 %v1250_v5, %v526_v10 }
 0x211   :  { %v1254_v7 = vpop.f32.mrb[2].mxu1  ;;  %v1763_v13 = vadd.f32 %v1252_v6, %v530_v11 }
 0x212   :  { %v1256_v8 = vpop.f32.mrb[3].mxu1  ;;  %v1765_v15 = vadd.f32 %v1254_v7, %v526_v10 }
 0x213   :  { %v1767_v19 = vadd.f32 %v1256_v8, %v530_v11 }
 0x21f   :  { %v1336_v14 = vpop.f32.mrb[16].mxu0 }
 0x220   :  { %v1762_v16 = vadd.f32 %v1761_v12, %v1336_v14  ;;  %v1338_v18 = vpop.f32.mrb[17].mxu0 }
 0x221   :  { %v1764_v20 = vadd.f32 %v1763_v13, %v1338_v18  ;;  %v1340_v21 = vpop.f32.mrb[18].mxu0 }
 0x222   :  { %v1766_v22 = vadd.f32 %v1765_v15, %v1340_v21  ;;  %v1342_v23 = vpop.f32.mrb[19].mxu0  ;;  %v1345_v25 = vmax.f32 %v1762_v16, 0.0 }
 0x223   :  { %v1768_v24 = vadd.f32 %v1767_v19, %v1342_v23  ;;  %v1346_v27 = vmax.f32 %v1764_v20, 0.0 }
 0x224   :  { %v1347_v26 = vmax.f32 %v1766_v22, 0.0 }
 0x225   :  { %v1348_v28 = vmax.f32 %v1768_v24, 0.0 }
 0x226   :  { %v1349_v38 = vpack.c.bf16 %v1347_v26, %v1345_v25 }
 0x227   :  { %v1350_v29 = vpack.c.bf16 %v1348_v28, %v1346_v27 }
 0x229   :  { %1518 = vmatprep.mubr.bf16.mxu1 %v1350_v29 }
 0x22a   :  { %1519 = vmatmul.mubr.bf16.vlgmr.msra.gmra.mrb[4].mxu1 %v1349_v38 }
 0x2fd   :  { %v1755_v40 = vpop.f32.mrb[4].mxu1 }
 0x2fe   :  { %v1756_v31 = vpop.f32.mrb[5].mxu1 }
 0x2ff   :  { %v1757_v32 = vadd.f32 %v1756_v31, %v1755_v40  ;;  %v1758_v33 = vpop.f32.mrb[6].mxu1 }
 0x300   :  { %v1759_v34 = vpop.f32.mrb[7].mxu1 }
 0x301   :  { %v1521_v35 = vadd.f32 %v1757_v32, %v1721_v30  ;;  %v1760_v41 = vadd.f32 %v1759_v34, %v1758_v33 }
 0x303   :  { %v1527_v43 = vmax.f32 %v1521_v35, 0.0  ;;  %v1524_v44 = vadd.f32 %v1760_v41, %v1721_v30 }
 0x305   :  { %v1528_v45 = vmax.f32 %v1524_v44, 0.0  ;;  %v1536_v46 = vmul.f32 %v1738_v42, %v1527_v43 }
 0x307   :  { %v1539_v47 = vsel %vm1538_vm1, %v1536_v46, 0.0  ;;  %v1537_v48 = vmul.f32 %v1738_v42, %v1528_v45 }
 0x308   :  { %1540 = vadd.xlane.f32.xlu0 %v1539_v47 }
 0x309   :  { %v1542_v49 = vsel %vm1538_vm1, %v1537_v48, 0.0 }
 0x30c   :  { %1543 = vadd.xlane.f32.xlu0 %v1542_v49 }
 0x395   :  { %v1541_v53 = vpop.xlane.xlu0 %1540 }
 0x396   :  { %v1547_v55 = vadd.f32 %v1546_v52, %v1541_v53 }
 0x398   :  { %v1556_v39 = vrot.slane %v1547_v55, %v1555_v54 }
 0x399   :  { %v1544_v57 = vpop.xlane.xlu0 %1543 }
 0x39a   :  { %v1548_v17 = vadd.f32 %v1546_v52, %v1544_v57 }
 0x39c   :  { %v1561_v58 = vrot.slane %v1548_v17, %v1560_v56 }
 0x39e   :  { %v1563_v59 = vsel %vm1562_vm2, %v1561_v58, %v1556_v39 }
 0x39f   :  { %1566 = vst.msk [vmem:[%s2258_s9] sm:$0x1] %vm1565_vm3, %v1563_v59 }
 0x3a0   :  { %1571 = vsyncpa [#allocation4], 1 }

</bundles_post_ra>
